<compile_context>
chip_gen: v7x
topology: tpu7x:2x2x1
jax: 0.10.0
libtpu: 0.0.40
codegen_flags: <defaults>
</compile_context>

<pallas_src>
import jax
import jax.numpy as jnp
from jax.experimental import pallas as pl
from jax.experimental.pallas import tpu as pltpu


def _round_up(x, m):
    return ((x + m - 1) // m) * m


_LANE = 128
_ROW_ALIGN = 16   # bf16 sublane tile is (16, 128); keep weight-block row
                  # offsets 16-aligned so static ref slices stay cheap.


def pack_params(params, z_dim, action_dim):
    """Pack the 7 (W, b) pairs into per-output-width bf16 slabs.

    Call once per parameter set (hoisted out of the forward path) and reuse
    the returned structure for every forward call.
    """
    n_layers = len(params)
    dims_in = [w.shape[0] for w, _ in params]
    dims_out = [w.shape[1] for w, _ in params]
    assert dims_in[0] == z_dim + action_dim

    wp = [_round_up(d, _LANE) for d in dims_out]          # padded output widths
    # K (rows) consumed by each matmul: layer 0 eats the raw concat width,
    # layer i>0 eats the previous layer's lane-padded activation.
    k_rows = [dims_in[0]] + [wp[i - 1] for i in range(1, n_layers)]

    widths = sorted(set(wp))
    meta = [None] * n_layers     # (slab_idx, weight_row_off, k_rows, bias_row)
    slabs = []
    for g_idx, width in enumerate(widths):
        layers = [i for i in range(n_layers) if wp[i] == width]
        # 16 bias rows at the top (one per member layer), then weight blocks,
        # each row-aligned.  Zero padding keeps padded lanes exactly zero
        # through the whole chain (0*0 contributions, relu(0)=0).
        offs = {}
        rows = _ROW_ALIGN
        for li in layers:
            offs[li] = rows
            rows += _round_up(k_rows[li], _ROW_ALIGN)
        slab = jnp.zeros((rows, width), jnp.float32)
        for b_row, li in enumerate(layers):
            w, b = params[li]
            slab = slab.at[b_row, :dims_out[li]].set(jnp.reshape(b, (-1,)))
            slab = slab.at[offs[li]:offs[li] + dims_in[li], :dims_out[li]].set(w)
            meta[li] = (g_idx, offs[li], k_rows[li], b_row)
        slabs.append(slab.astype(jnp.bfloat16))           # bf16 weight storage

    return {
        "slabs": tuple(slabs),
        "meta": tuple(meta),
        "widths": tuple(widths),
        "wp": tuple(wp),
        "k_in": dims_in[0],
        "out_dim": dims_out[-1],
    }


def _make_kernel(meta, n_slabs):
    """Kernel factory with static slab offsets / widths baked in."""
    n_layers = len(meta)

    def kernel(*refs):
        x_ref = refs[0]
        slab_refs = refs[1:1 + n_slabs]
        o_ref = refs[1 + n_slabs]

        h = x_ref[...]                                    # bf16 (TILE_B, K_in)
        for li, (g, w_off, k, b_row) in enumerate(meta):
            w_ref = slab_refs[g]
            # bf16 x bf16 matmul, f32 accumulation on the MXU.
            y = jnp.dot(h, w_ref[w_off:w_off + k, :],
                        preferred_element_type=jnp.float32)
            y = y + w_ref[b_row:b_row + 1, :].astype(jnp.float32)
            if li + 1 < n_layers:
                h = jnp.maximum(y, 0.0).astype(jnp.bfloat16)
            else:
                o_ref[...] = y.astype(o_ref.dtype)        # lane-dense f32 store

    return kernel


def contrastive_head_forward(x, action, packed):
    """Forward pass. `packed` comes from pack_params() (built once, reused)."""
    B = x.shape[0]
    k_in = x.shape[1] + action.shape[1]
    assert k_in == packed["k_in"]
    wp_out = packed["wp"][-1]

    # fc1's concat lives in the wrapper (XLA side); inputs are cast to bf16 so
    # the input DMA is half-width and the first matmul is MXU-native.
    x_cat = jnp.concatenate([x, action], axis=1).astype(jnp.bfloat16)

    # TILE_B: 256 fills v6e's 256-wide MXU; only used when the grid still has
    # >= 2 steps so both v7x TensorCores get work.  Small batches use one tile.
    if B >= 512:
        tile_b = 256
    elif B >= 128:
        tile_b = 128
    else:
        tile_b = _round_up(B, _ROW_ALIGN)
    b_pad = _round_up(B, tile_b)
    if b_pad != B:
        x_cat = jnp.pad(x_cat, ((0, b_pad - B), (0, 0)))
    grid = (b_pad // tile_b,)

    slabs = packed["slabs"]
    n_slabs = len(slabs)
    kernel = _make_kernel(packed["meta"], n_slabs)

    in_specs = [pl.BlockSpec((tile_b, k_in), lambda i: (i, 0))]
    for s in slabs:
        # Grid-constant index map: the slab is DMA'd once and stays resident;
        # single-buffer it so it doesn't cost 2x its VMEM footprint.
        in_specs.append(
            pl.BlockSpec(tuple(s.shape), lambda i: (0, 0),
                         pipeline_mode=pl.Buffered(1)))

    # Explicit VMEM budget: single-buffered bf16 slabs + double-buffered
    # input/output tiles + a few f32 working activations, plus headroom.
    slab_bytes = sum(s.shape[0] * s.shape[1] * 2 for s in slabs)
    io_bytes = 2 * (tile_b * k_in * 2) + 2 * (tile_b * wp_out * 4)
    act_bytes = 4 * tile_b * max(packed["widths"]) * 4
    vmem_limit = slab_bytes + io_bytes + act_bytes + (2 << 20)
    vmem_limit = int(min(max(vmem_limit, 8 << 20), 128 << 20))

    out = pl.pallas_call(
        kernel,
        out_shape=jax.ShapeDtypeStruct((b_pad, wp_out), jnp.float32),
        grid=grid,
        in_specs=in_specs,
        out_specs=pl.BlockSpec((tile_b, wp_out), lambda i: (i, 0)),
        compiler_params=pltpu.CompilerParams(
            dimension_semantics=("parallel",),
            vmem_limit_bytes=vmem_limit),
    )(x_cat, *slabs)

    return out[:B, :packed["out_dim"]]


def init_params(key, z_dim, action_dim, hidden_dim):
    """Deterministic synthetic weights (same shapes as the torch module)."""
    half = hidden_dim // 2
    dims = [
        (z_dim + action_dim, half),        # fc1
        (half, hidden_dim),                # fc2
        (hidden_dim, hidden_dim * 2),      # fc_extra_1
        (hidden_dim * 2, hidden_dim * 2),  # fc_extra_2
        (hidden_dim * 2, hidden_dim),      # fc_extra_3
        (hidden_dim, half),                # fc3
        (half, z_dim),                     # fc4
    ]
    params = []
    for (din, dout) in dims:
        key, kw, kb = jax.random.split(key, 3)
        scale = 1.0 / jnp.sqrt(din)
        w = jax.random.uniform(kw, (din, dout), jnp.float32, -scale, scale)
        b = jax.random.uniform(kb, (1, dout), jnp.float32, -scale, scale)
        params.append((w, b))
    return params


def reference_forward_f32(x, action, params):
    """Original module semantics, pure f32."""
    h = jnp.concatenate([x, action], axis=1)
    for i, (w, b) in enumerate(params):
        h = h @ w + b
        if i < len(params) - 1:
            h = jnp.maximum(h, 0.0)
    return h


def reference_forward_bf16(x, action, params):
    """Mirrors the kernel's numerics: bf16 operands, f32 accumulation."""
    h = jnp.concatenate([x, action], axis=1).astype(jnp.bfloat16)
    y = None
    for i, (w, b) in enumerate(params):
        y = jnp.dot(h, w.astype(jnp.bfloat16),
                    preferred_element_type=jnp.float32)
        y = y + b.astype(jnp.bfloat16).astype(jnp.float32)
        if i < len(params) - 1:
            h = jnp.maximum(y, 0.0).astype(jnp.bfloat16)
    return y


if __name__ == "__main__":
    z_dim, action_dim, hidden_dim = 8, 4, 32
    batch = 8

    key = jax.random.PRNGKey(0)
    kx, ka, kp = jax.random.split(key, 3)
    x = jax.random.normal(kx, (batch, z_dim), jnp.float32)
    action = jax.random.normal(ka, (batch, action_dim), jnp.float32)
    params = init_params(kp, z_dim, action_dim, hidden_dim)

    packed = pack_params(params, z_dim, action_dim)   # hoisted: built once

    out = contrastive_head_forward(x, action, packed)
    out = jax.block_until_ready(out)

    assert out.shape == (batch, z_dim)

    # Tight check against a reference with identical bf16-weight / f32-accum
    # numerics (verifies the kernel implements the 7-layer MLP correctly).
    ref_bf16 = reference_forward_bf16(x, action, params)
    assert jnp.allclose(out, ref_bf16, atol=2e-3, rtol=2e-3), \
        "mismatch vs bf16-numerics reference"

    # Loose check against the original f32 module semantics (bf16 weight
    # storage introduces ~1e-2-level relative error over the 7-layer chain).
    ref_f32 = reference_forward_f32(x, action, params)
    assert jnp.allclose(out, ref_f32, atol=5e-2, rtol=5e-2), \
        "mismatch vs f32 reference"

    print("KERNEL_OK")
</pallas_src>

<mosaic_0001>
module attributes {stable_mosaic.version = 11 : i64} {
  func.func @kernel(%arg0: i32, %arg1: memref<16x12xbf16, #tpu.memory_space<vmem>>, %arg2: memref<800x128xbf16, #tpu.memory_space<vmem>>, %arg3: memref<16x128xf32, #tpu.memory_space<vmem>>) attributes {dimension_semantics = [#tpu.dimension_semantics<parallel>], iteration_bounds = array<i64: 1>, scalar_prefetch = 0 : i64, scratch_operands = 0 : i64, tpu.core_type = #tpu.core_type<tc>, window_params = [{transform_indices = @transform_0, window_bounds = array<i64: 16, 12>}, {pipeline_mode = #tpu.pipeline_mode<synchronous>, transform_indices = @transform_1, window_bounds = array<i64: 800, 128>}, {transform_indices = @transform_2, window_bounds = array<i64: 16, 128>}]} {
    %c0 = arith.constant 0 : index
    %c0_0 = arith.constant 0 : index
    %0 = vector.load %arg1[%c0, %c0_0] : memref<16x12xbf16, #tpu.memory_space<vmem>>, vector<16x12xbf16>
    %c16 = arith.constant 16 : index
    %c0_1 = arith.constant 0 : index
    %1 = vector.load %arg2[%c16, %c0_1] : memref<800x128xbf16, #tpu.memory_space<vmem>>, vector<12x128xbf16>
    %cst = arith.constant dense<0.000000e+00> : vector<16x128xf32>
    %2 = tpu.matmul %0, %1, %cst {dimension_numbers = #tpu.dot_dimension_numbers<[1], [0], [0], [1], [0, 0, 1, 1], [], []>} : vector<16x12xbf16>, vector<12x128xbf16>, vector<16x128xf32> -> vector<16x128xf32>
    %c0_2 = arith.constant 0 : index
    %c0_3 = arith.constant 0 : index
    %3 = vector.load %arg2[%c0_2, %c0_3] : memref<800x128xbf16, #tpu.memory_space<vmem>>, vector<1x128xbf16>
    %4 = arith.extf %3 : vector<1x128xbf16> to vector<1x128xf32>
    %5 = vector.broadcast %4 : vector<1x128xf32> to vector<16x128xf32>
    %6 = arith.addf %2, %5 : vector<16x128xf32>
    %cst_4 = arith.constant 0.000000e+00 : f32
    %7 = vector.broadcast %cst_4 : f32 to vector<16x128xf32>
    %8 = arith.maximumf %6, %7 : vector<16x128xf32>
    %9 = arith.truncf %8 : vector<16x128xf32> to vector<16x128xbf16>
    %c32 = arith.constant 32 : index
    %c0_5 = arith.constant 0 : index
    %10 = vector.load %arg2[%c32, %c0_5] : memref<800x128xbf16, #tpu.memory_space<vmem>>, vector<128x128xbf16>
    %cst_6 = arith.constant dense<0.000000e+00> : vector<16x128xf32>
    %11 = tpu.matmul %9, %10, %cst_6 {dimension_numbers = #tpu.dot_dimension_numbers<[1], [0], [0], [1], [0, 0, 1, 1], [], []>} : vector<16x128xbf16>, vector<128x128xbf16>, vector<16x128xf32> -> vector<16x128xf32>
    %c1 = arith.constant 1 : index
    %c0_7 = arith.constant 0 : index
    %12 = vector.load %arg2[%c1, %c0_7] : memref<800x128xbf16, #tpu.memory_space<vmem>>, vector<1x128xbf16>
    %13 = arith.extf %12 : vector<1x128xbf16> to vector<1x128xf32>
    %14 = vector.broadcast %13 : vector<1x128xf32> to vector<16x128xf32>
    %15 = arith.addf %11, %14 : vector<16x128xf32>
    %cst_8 = arith.constant 0.000000e+00 : f32
    %16 = vector.broadcast %cst_8 : f32 to vector<16x128xf32>
    %17 = arith.maximumf %15, %16 : vector<16x128xf32>
    %18 = arith.truncf %17 : vector<16x128xf32> to vector<16x128xbf16>
    %c160 = arith.constant 160 : index
    %c0_9 = arith.constant 0 : index
    %19 = vector.load %arg2[%c160, %c0_9] : memref<800x128xbf16, #tpu.memory_space<vmem>>, vector<128x128xbf16>
    %cst_10 = arith.constant dense<0.000000e+00> : vector<16x128xf32>
    %20 = tpu.matmul %18, %19, %cst_10 {dimension_numbers = #tpu.dot_dimension_numbers<[1], [0], [0], [1], [0, 0, 1, 1], [], []>} : vector<16x128xbf16>, vector<128x128xbf16>, vector<16x128xf32> -> vector<16x128xf32>
    %c2 = arith.constant 2 : index
    %c0_11 = arith.constant 0 : index
    %21 = vector.load %arg2[%c2, %c0_11] : memref<800x128xbf16, #tpu.memory_space<vmem>>, vector<1x128xbf16>
    %22 = arith.extf %21 : vector<1x128xbf16> to vector<1x128xf32>
    %23 = vector.broadcast %22 : vector<1x128xf32> to vector<16x128xf32>
    %24 = arith.addf %20, %23 : vector<16x128xf32>
    %cst_12 = arith.constant 0.000000e+00 : f32
    %25 = vector.broadcast %cst_12 : f32 to vector<16x128xf32>
    %26 = arith.maximumf %24, %25 : vector<16x128xf32>
    %27 = arith.truncf %26 : vector<16x128xf32> to vector<16x128xbf16>
    %c288 = arith.constant 288 : index
    %c0_13 = arith.constant 0 : index
    %28 = vector.load %arg2[%c288, %c0_13] : memref<800x128xbf16, #tpu.memory_space<vmem>>, vector<128x128xbf16>
    %cst_14 = arith.constant dense<0.000000e+00> : vector<16x128xf32>
    %29 = tpu.matmul %27, %28, %cst_14 {dimension_numbers = #tpu.dot_dimension_numbers<[1], [0], [0], [1], [0, 0, 1, 1], [], []>} : vector<16x128xbf16>, vector<128x128xbf16>, vector<16x128xf32> -> vector<16x128xf32>
    %c3 = arith.constant 3 : index
    %c0_15 = arith.constant 0 : index
    %30 = vector.load %arg2[%c3, %c0_15] : memref<800x128xbf16, #tpu.memory_space<vmem>>, vector<1x128xbf16>
    %31 = arith.extf %30 : vector<1x128xbf16> to vector<1x128xf32>
    %32 = vector.broadcast %31 : vector<1x128xf32> to vector<16x128xf32>
    %33 = arith.addf %29, %32 : vector<16x128xf32>
    %cst_16 = arith.constant 0.000000e+00 : f32
    %34 = vector.broadcast %cst_16 : f32 to vector<16x128xf32>
    %35 = arith.maximumf %33, %34 : vector<16x128xf32>
    %36 = arith.truncf %35 : vector<16x128xf32> to vector<16x128xbf16>
    %c416 = arith.constant 416 : index
    %c0_17 = arith.constant 0 : index
    %37 = vector.load %arg2[%c416, %c0_17] : memref<800x128xbf16, #tpu.memory_space<vmem>>, vector<128x128xbf16>
    %cst_18 = arith.constant dense<0.000000e+00> : vector<16x128xf32>
    %38 = tpu.matmul %36, %37, %cst_18 {dimension_numbers = #tpu.dot_dimension_numbers<[1], [0], [0], [1], [0, 0, 1, 1], [], []>} : vector<16x128xbf16>, vector<128x128xbf16>, vector<16x128xf32> -> vector<16x128xf32>
    %c4 = arith.constant 4 : index
    %c0_19 = arith.constant 0 : index
    %39 = vector.load %arg2[%c4, %c0_19] : memref<800x128xbf16, #tpu.memory_space<vmem>>, vector<1x128xbf16>
    %40 = arith.extf %39 : vector<1x128xbf16> to vector<1x128xf32>
    %41 = vector.broadcast %40 : vector<1x128xf32> to vector<16x128xf32>
    %42 = arith.addf %38, %41 : vector<16x128xf32>
    %cst_20 = arith.constant 0.000000e+00 : f32
    %43 = vector.broadcast %cst_20 : f32 to vector<16x128xf32>
    %44 = arith.maximumf %42, %43 : vector<16x128xf32>
    %45 = arith.truncf %44 : vector<16x128xf32> to vector<16x128xbf16>
    %c544 = arith.constant 544 : index
    %c0_21 = arith.constant 0 : index
    %46 = vector.load %arg2[%c544, %c0_21] : memref<800x128xbf16, #tpu.memory_space<vmem>>, vector<128x128xbf16>
    %cst_22 = arith.constant dense<0.000000e+00> : vector<16x128xf32>
    %47 = tpu.matmul %45, %46, %cst_22 {dimension_numbers = #tpu.dot_dimension_numbers<[1], [0], [0], [1], [0, 0, 1, 1], [], []>} : vector<16x128xbf16>, vector<128x128xbf16>, vector<16x128xf32> -> vector<16x128xf32>
    %c5 = arith.constant 5 : index
    %c0_23 = arith.constant 0 : index
    %48 = vector.load %arg2[%c5, %c0_23] : memref<800x128xbf16, #tpu.memory_space<vmem>>, vector<1x128xbf16>
    %49 = arith.extf %48 : vector<1x128xbf16> to vector<1x128xf32>
    %50 = vector.broadcast %49 : vector<1x128xf32> to vector<16x128xf32>
    %51 = arith.addf %47, %50 : vector<16x128xf32>
    %cst_24 = arith.constant 0.000000e+00 : f32
    %52 = vector.broadcast %cst_24 : f32 to vector<16x128xf32>
    %53 = arith.maximumf %51, %52 : vector<16x128xf32>
    %54 = arith.truncf %53 : vector<16x128xf32> to vector<16x128xbf16>
    %c672 = arith.constant 672 : index
    %c0_25 = arith.constant 0 : index
    %55 = vector.load %arg2[%c672, %c0_25] : memref<800x128xbf16, #tpu.memory_space<vmem>>, vector<128x128xbf16>
    %cst_26 = arith.constant dense<0.000000e+00> : vector<16x128xf32>
    %56 = tpu.matmul %54, %55, %cst_26 {dimension_numbers = #tpu.dot_dimension_numbers<[1], [0], [0], [1], [0, 0, 1, 1], [], []>} : vector<16x128xbf16>, vector<128x128xbf16>, vector<16x128xf32> -> vector<16x128xf32>
    %c6 = arith.constant 6 : index
    %c0_27 = arith.constant 0 : index
    %57 = vector.load %arg2[%c6, %c0_27] : memref<800x128xbf16, #tpu.memory_space<vmem>>, vector<1x128xbf16>
    %58 = arith.extf %57 : vector<1x128xbf16> to vector<1x128xf32>
    %59 = vector.broadcast %58 : vector<1x128xf32> to vector<16x128xf32>
    %60 = arith.addf %56, %59 : vector<16x128xf32>
    %c0_28 = arith.constant 0 : index
    %c0_29 = arith.constant 0 : index
    %61 = vector.load %arg3[%c0_28, %c0_29] : memref<16x128xf32, #tpu.memory_space<vmem>>, vector<16x128xf32>
    tpu.vector_store %arg3[%c0_28, %c0_29], %60 {strides = array<i32>} : memref<16x128xf32, #tpu.memory_space<vmem>>, vector<16x128xf32>,
    return
  }
  func.func @transform_0(%arg0: i32) -> (i32, i32) {
    %c0_i32 = arith.constant 0 : i32
    %c0_i32_0 = arith.constant 0 : i32
    return %arg0, %c0_i32 : i32, i32
  }
  func.func @transform_1(%arg0: i32) -> (i32, i32) {
    %c0_i32 = arith.constant 0 : i32
    %c0_i32_0 = arith.constant 0 : i32
    %c0_i32_1 = arith.constant 0 : i32
    return %c0_i32, %c0_i32_0 : i32, i32
  }
  func.func @transform_2(%arg0: i32) -> (i32, i32) {
    %c0_i32 = arith.constant 0 : i32
    %c0_i32_0 = arith.constant 0 : i32
    return %arg0, %c0_i32 : i32, i32
  }
}

</mosaic_0001>

<bundles_post_ra>
// kernel: tpu_custom_call.1
= control target key start
LH: loop header
LB: loop body
LE: loop exit
PB: predicated region body
PF: predicated region fallthrough
CT: control target
= control target key end

     0   :  { %7 = vsyncpa [#allocation3], 0  ;;  %s1304_s0 = inlined_call_operand.hbm [shape: bf16[16,12], index: 0, kind: input, shape index: {}]   ;;  %s1305_s1 = inlined_call_operand.hbm [shape: bf16[800,128], index: 1, kind: input, shape index: {}]   ;;  %s1306_s2 = inlined_call_operand.hbm [shape: f32[16,128], index: 2, kind: output, shape index: {}]  }
   0x1   :  { %8 = vsyncpa [#allocation6], 0 }
   0x2   :  { %9 = vsyncpa [#allocation4], 0  ;;  %s1172_s9 = smov [#allocation2]   ;;  %s1100_s13 = scalar_lea.hbm %s1304_s0, 128 }
   0x3   :  { %s15_s10 = sshll.u32 %s1172_s9, 4  ;;  %p1101_p0 = scmp.ne.s32.totalorder %s1304_s0, %s1100_s13  ;;  %s16_s10 = int_to_ptr.vmem [resolvable:$true] %s15_s10 }
   0x4   :  { %p1104_p1 = scmp.lt.u32.totalorder %s1100_s13, %s1304_s0 }
   0x6   :  { %p1106_p2 = pnand %p1104_p1, %p1101_p0 }
   0x8   :  { %1109 = shalt.err (!%p1106_p2)
}
   0x9   :  { %s1110_s18 = scalar_lea.vmem %s16_s10, 128  ;;  %p1115_p4 = scmp.lt.s32.totalorder %s16_s10, %s16_s10 }
   0xa   :  { %p1111_p3 = scmp.ne.s32.totalorder %s16_s10, %s1110_s18  ;;  %p1116_p5 = scmp.lt.s32.totalorder %s1110_s18, %s1110_s18 }
   0xc   :  { %p1117_p6 = por %p1116_p5, %p1115_p4 }
   0xe   :  { %p1118_p7 = pnand %p1117_p6, %p1111_p3 }
  0x10   :  { %1121 = shalt.err (!%p1118_p7)
}
  0x11   :  { %s1173_s19 = smov 64   ;;  %s1174_s20 = smov 4  }
  0x12   :  { %21 = dma.hbm_to_vmem [thread:$0]  %s1304_s0, 128, %s16_s10, [#allocation3], %s1173_s19, %s1173_s19, %s1174_s20  }
  0x13   :  { %s1175_s23 = smov [#allocation5]   ;;  %s1122_s27 = scalar_lea.hbm %s1305_s1, 6400 }
  0x14   :  { %s27_s24 = sshll.u32 %s1175_s23, 4  ;;  %p1123_p8 = scmp.ne.s32.totalorder %s1305_s1, %s1122_s27  ;;  %s28_s24 = int_to_ptr.vmem [resolvable:$true] %s27_s24 }
  0x15   :  { %p1126_p9 = scmp.lt.u32.totalorder %s1122_s27, %s1305_s1 }
  0x17   :  { %p1128_p10 = pnand %p1126_p9, %p1123_p8 }
  0x19   :  { %1131 = shalt.err (!%p1128_p10)
}
  0x1a   :  { %s1132_s4 = scalar_lea.vmem %s28_s24, 6400  ;;  %p1137_p12 = scmp.lt.s32.totalorder %s28_s24, %s28_s24 }
  0x1b   :  { %p1133_p11 = scmp.ne.s32.totalorder %s28_s24, %s1132_s4  ;;  %p1138_p13 = scmp.lt.s32.totalorder %s1132_s4, %s1132_s4 }
  0x1d   :  { %p1139_p0 = por %p1138_p13, %p1137_p12 }
  0x1f   :  { %p1140_p1 = pnand %p1139_p0, %p1133_p11 }
  0x21   :  { %1143 = shalt.err (!%p1140_p1)
}
  0x22   :  { %33 = dma.hbm_to_vmem [thread:$0]  %s1305_s1, 6400, %s28_s24, [#allocation6], %s1173_s19, %s1173_s19, %s1174_s20  }
  0x23   :  { %1166 = dma.done.wait [#allocation3], 128  }
  0x24   :  { %1167 = vsyncadd [#allocation3], 4294967168 }
  0x25   :  { %1168 = dma.done.wait [#allocation6], 6400  }
  0x26   :  { %1169 = vsyncadd [#allocation6], 4294960896  ;;  %v1176_v0 = vmov 0.0   ;;  %vm1177_vm0 = vmmov 0   ;;  %vm65_vm1 = vcmask 1045504   ;;  %v1051_v2 = vld [vmem:[#allocation2] sm:$0xff]   ;;  %v47_v18 = vlaneseq }
  0x27   :  { %915 = vmatprep.subr.bf16.mxu0 %v1176_v0  ;;  %917 = vmatprep.mubr.msk.bf16.mxu0 %vm1177_vm0, %v1176_v0  ;;  %v1050_v1 = vld [vmem:[#allocation5 + $0x8] sm:$0x3f]   ;;  %v1052_v4 = vld [vmem:[#allocation5 + $0x10] sm:$0xff]   ;;  %vm61_vm2 = vcmask 97280   ;;  %v1053_v5 = vld [vmem:[#allocation5 + $0x18] sm:$0xff]   ;;  %s1178_s1 = smov [#allocation7]  }
  0x28   :  { %921 = vmatprep.subr.bf16.mxu1 %v1176_v0  ;;  %937 = vmatprep.mubr.msk.bf16.mxu1 %vm1177_vm0, %v1176_v0  ;;  %v67_v3 = vsel %vm65_vm1, %v1050_v1, 0  ;;  %v1054_v6 = vld [vmem:[#allocation5 + $0x20] sm:$0xff]   ;;  %v1055_v7 = vld [vmem:[#allocation5 + $0x28] sm:$0xff]   ;;  %v1056_v8 = vld [vmem:[#allocation5 + $0x30] sm:$0xff]   ;;  %v1243_v19 = vshrl.u32 %v47_v18, 7  ;;  %s795_s6 = sshll.u32 %s1178_s1, 4  ;;  %s796_s6 = int_to_ptr.vmem [resolvable:$true] %s795_s6 }
  0x29   :  { %916 = vmatpush3.bf16.msra.mxu0 %v67_v3  ;;  %922 = vmatpush3.bf16.msra.mxu1 %v1052_v4  ;;  %v1057_v9 = vld [vmem:[#allocation5 + $0x38] sm:$0xff]   ;;  %v1058_v10 = vld [vmem:[#allocation5 + $0x40] sm:$0xff]   ;;  %v1059_v11 = vld [vmem:[#allocation5 + $0x48] sm:$0xff]   ;;  %s1144_s7 = scalar_lea.vmem %s796_s6, 256  ;;  %p1149_p3 = scmp.lt.s32.totalorder %s796_s6, %s796_s6 }
  0x2a   :  { %941 = vmatprep.subr.bf16.mxu0 %v1176_v0  ;;  %923 = vmatprep.subr.bf16.mxu1 %v1176_v0  ;;  %v1060_v12 = vld [vmem:[#allocation5 + $0x50] sm:$0xff]   ;;  %v1061_v13 = vld [vmem:[#allocation5 + $0x58] sm:$0xff]   ;;  %v1062_v14 = vld [vmem:[#allocation5 + $0x60] sm:$0xff]   ;;  %v49_v22 = vsub.s32 0, %v1243_v19  ;;  %v131_v41 = vsub.s32 1, %v1243_v19  ;;  %v245_v62 = vsub.s32 2, %v1243_v19  ;;  %p1145_p2 = scmp.ne.s32.totalorder %s796_s6, %s1144_s7  ;;  %p1150_p4 = scmp.lt.s32.totalorder %s1144_s7, %s1144_s7 }
  0x2b   :  { %v1063_v15 = vld [vmem:[#allocation5 + $0x68] sm:$0xff]   ;;  %v1064_v16 = vld [vmem:[#allocation5 + $0x70] sm:$0xff]   ;;  %v1065_v17 = vld [vmem:[#allocation5 + $0x78] sm:$0xff]   ;;  %v357_v18 = vsub.s32 3, %v1243_v19 }
  0x2c   :  { %918 = vmatmul.mubr.msk.bf16.vlgmr.msra.gmra.mrb[0].mxu0 %vm61_vm2, %v1051_v2  ;;  %v45_v20 = vld [vmem:[#allocation5] sm:$0x1]  ;;  %v1067_v34 = vld [vmem:[#allocation5 + $0x88] sm:$0xff]   ;;  %v1068_v35 = vld [vmem:[#allocation5 + $0x90] sm:$0xff]   ;;  %p1151_p5 = por %p1150_p4, %p1149_p3 }
  0x2d   :  { %957 = vmatprep.mubr.msk.bf16.mxu0 %vm1177_vm0, %v1176_v0  ;;  %924 = vmatpush3.bf16.msra.mxu1 %v1053_v5  ;;  %v46_v21 = vunpack.c.l.bf16 %v45_v20  ;;  %v1066_v33 = vld [vmem:[#allocation5 + $0x80] sm:$0xff]   ;;  %v1069_v36 = vld [vmem:[#allocation5 + $0x98] sm:$0xff]   ;;  %v1071_v38 = vld [vmem:[#allocation5 + $0xa8] sm:$0xff]  }
  0x2e   :  { %925 = vmatprep.subr.bf16.mxu1 %v1176_v0  ;;  %942 = vmatpush3.bf16.msra.mxu0 %v1060_v12  ;;  %v1070_v37 = vld [vmem:[#allocation5 + $0xa0] sm:$0xff]   ;;  %v1072_v39 = vld [vmem:[#allocation5 + $0xb0] sm:$0xff]   ;;  %v1073_v40 = vld [vmem:[#allocation5 + $0xb8] sm:$0xff]   ;;  %p1152_p6 = pnand %p1151_p5, %p1145_p2 }
  0x2f   :  { %943 = vmatprep.subr.bf16.mxu0 %v1176_v0  ;;  %v50_v23 = vrot.slane %v46_v21, %v49_v22  ;;  %v132_v42 = vrot.slane %v46_v21, %v131_v41  ;;  %v1074_v52 = vld [vmem:[#allocation5 + $0xc0] sm:$0xff]   ;;  %v1075_v53 = vld [vmem:[#allocation5 + $0xc8] sm:$0xff]   ;;  %v1076_v54 = vld [vmem:[#allocation5 + $0xd0] sm:$0xff]  }
  0x30   :  { %v1077_v55 = vld [vmem:[#allocation5 + $0xd8] sm:$0xff]   ;;  %v1078_v56 = vld [vmem:[#allocation5 + $0xe0] sm:$0xff]   ;;  %v1079_v57 = vld [vmem:[#allocation5 + $0xe8] sm:$0xff]  }
  0x31   :  { %926 = vmatpush3.bf16.msra.mxu1 %v1054_v6  ;;  %v1080_v58 = vld [vmem:[#allocation5 + $0xf0] sm:$0xff]   ;;  %v1081_v59 = vld [vmem:[#allocation5 + $0xf8] sm:$0xff]   ;;  %v241_v60 = vld [vmem:[#allocation5] sm:$0x2] }
  0x32   :  { %927 = vmatprep.subr.bf16.mxu1 %v1176_v0  ;;  %944 = vmatpush3.bf16.msra.mxu0 %v1061_v13  ;;  %v242_v61 = vunpack.c.l.bf16 %v241_v60  ;;  %v1084_v12 = vld [vmem:[#allocation5 + $0x110] sm:$0xff]   ;;  %v1085_v13 = vld [vmem:[#allocation5 + $0x118] sm:$0xff]  }
  0x33   :  { %945 = vmatprep.subr.bf16.mxu0 %v1176_v0 }
  0x34   :  { %v246_v63 = vrot.slane %v242_v61, %v245_v62  ;;  %v358_v20 = vrot.slane %v242_v61, %v357_v18 }
  0x35   :  { %928 = vmatpush3.bf16.msra.mxu1 %v1055_v7 }
  0x36   :  { %929 = vmatprep.subr.bf16.mxu1 %v1176_v0  ;;  %946 = vmatpush3.bf16.msra.mxu0 %v1062_v14  ;;  %v1086_v14 = vld [vmem:[#allocation5 + $0x120] sm:$0xff]  }
  0x37   :  { %947 = vmatprep.subr.bf16.mxu0 %v1176_v0 }
  0x39   :  { %930 = vmatpush3.bf16.msra.mxu1 %v1056_v8 }
  0x3a   :  { %931 = vmatprep.subr.bf16.mxu1 %v1176_v0  ;;  %948 = vmatpush3.bf16.msra.mxu0 %v1063_v15  ;;  %v1087_v15 = vld [vmem:[#allocation5 + $0x128] sm:$0xff]  }
  0x3b   :  { %949 = vmatprep.subr.bf16.mxu0 %v1176_v0 }
  0x3d   :  { %932 = vmatpush3.bf16.msra.mxu1 %v1057_v9 }
  0x3e   :  { %933 = vmatprep.subr.bf16.mxu1 %v1176_v0  ;;  %950 = vmatpush3.bf16.msra.mxu0 %v1064_v16  ;;  %v1088_v16 = vld [vmem:[#allocation5 + $0x130] sm:$0xff]  }
  0x3f   :  { %951 = vmatprep.subr.bf16.mxu0 %v1176_v0 }
  0x41   :  { %934 = vmatpush3.bf16.msra.mxu1 %v1058_v10  ;;  %v1082_v10 = vld [vmem:[#allocation5 + $0x100] sm:$0xff]  }
  0x42   :  { %935 = vmatprep.subr.bf16.mxu1 %v1176_v0  ;;  %952 = vmatpush3.bf16.msra.mxu0 %v1065_v17  ;;  %v1089_v17 = vld [vmem:[#allocation5 + $0x138] sm:$0xff]  }
  0x43   :  { %953 = vmatprep.subr.bf16.mxu0 %v1176_v0 }
  0x45   :  { %936 = vmatpush3.bf16.msra.mxu1 %v1059_v11  ;;  %v1083_v11 = vld [vmem:[#allocation5 + $0x108] sm:$0xff]  }
  0x46   :  { %961 = vmatprep.subr.bf16.mxu1 %v1176_v0  ;;  %954 = vmatpush3.bf16.msra.mxu0 %v1066_v33  ;;  %v1093_v33 = vld [vmem:[#allocation5 + $0x158] sm:$0xff]  }
  0x47   :  { %955 = vmatprep.subr.bf16.mxu0 %v1176_v0 }
  0x4a   :  { %956 = vmatpush3.bf16.msra.mxu0 %v1067_v34  ;;  %v1094_v34 = vld [vmem:[#allocation5 + $0x160] sm:$0xff]  }
  0x4b   :  { %981 = vmatprep.subr.bf16.mxu0 %v1176_v0 }
  0xff   :  { %v103_v24 = vpop.f32.mrb[0].mxu0 }
 0x100   :  { %v104_v25 = vadd.f32 %v103_v24, %v50_v23  ;;  %v919_v26 = vpop.f32.mrb[1].mxu0 }
 0x101   :  { %v106_v27 = vpop.f32.mrb[2].mxu0 }
 0x102   :  { %v107_v28 = vadd.f32 %v106_v27, %v50_v23  ;;  %v920_v29 = vpop.f32.mrb[3].mxu0  ;;  %v110_v30 = vmax.f32 %v104_v25, 0.0 }
 0x104   :  { %v111_v31 = vmax.f32 %v107_v28, 0.0 }
 0x106   :  { %v112_v32 = vpack.c.bf16 %v111_v31, %v110_v30  ;;  %v1090_v30 = vld [vmem:[#allocation5 + $0x140] sm:$0xff]   ;;  %v1091_v31 = vld [vmem:[#allocation5 + $0x148] sm:$0xff]  }
 0x108   :  { %938 = vmatmul.mubr.bf16.vlgmr.msra.gmra.mrb[0].mxu1 %v112_v32  ;;  %v1092_v32 = vld [vmem:[#allocation5 + $0x150] sm:$0xff]  }
 0x109   :  { %977 = vmatprep.mubr.msk.bf16.mxu1 %vm1177_vm0, %v1176_v0  ;;  %962 = vmatpush3.bf16.msra.mxu1 %v1068_v35  ;;  %v1095_v35 = vld [vmem:[#allocation5 + $0x168] sm:$0xff]  }
 0x10a   :  { %963 = vmatprep.subr.bf16.mxu1 %v1176_v0 }
 0x10d   :  { %964 = vmatpush3.bf16.msra.mxu1 %v1069_v36  ;;  %v1096_v36 = vld [vmem:[#allocation5 + $0x170] sm:$0xff]  }
 0x10e   :  { %965 = vmatprep.subr.bf16.mxu1 %v1176_v0 }
 0x111   :  { %966 = vmatpush3.bf16.msra.mxu1 %v1070_v37  ;;  %v1097_v37 = vld [vmem:[#allocation5 + $0x178] sm:$0xff]  }
 0x112   :  { %967 = vmatprep.subr.bf16.mxu1 %v1176_v0 }
 0x115   :  { %968 = vmatpush3.bf16.msra.mxu1 %v1071_v38  ;;  %v467_v38 = vld [vmem:[#allocation5] sm:$0x4] }
 0x116   :  { %969 = vmatprep.subr.bf16.mxu1 %v1176_v0 }
 0x119   :  { %970 = vmatpush3.bf16.msra.mxu1 %v1072_v39  ;;  %v468_v39 = vunpack.c.l.bf16 %v467_v38 }
 0x11a   :  { %971 = vmatprep.subr.bf16.mxu1 %v1176_v0 }
 0x11d   :  { %972 = vmatpush3.bf16.msra.mxu1 %v1073_v40  ;;  %v471_v40 = vsub.s32 4, %v1243_v19 }
 0x11e   :  { %973 = vmatprep.subr.bf16.mxu1 %v1176_v0 }
 0x11f   :  { %v472_v41 = vrot.slane %v468_v39, %v471_v40 }
 0x121   :  { %974 = vmatpush3.bf16.msra.mxu1 %v1074_v52  ;;  %v1099_v52 = vld [vmem:[#allocation5 + $0x188] sm:$0xff]  }
 0x122   :  { %975 = vmatprep.subr.bf16.mxu1 %v1176_v0 }
 0x125   :  { %976 = vmatpush3.bf16.msra.mxu1 %v1075_v53  ;;  %v583_v53 = vsub.s32 5, %v1243_v19 }
 0x126   :  { %1001 = vmatprep.subr.bf16.mxu1 %v1176_v0 }
 0x1db   :  { %v215_v43 = vpop.f32.mrb[0].mxu1 }
 0x1dc   :  { %v216_v44 = vadd.f32 %v215_v43, %v132_v42  ;;  %v939_v45 = vpop.f32.mrb[1].mxu1 }
 0x1dd   :  { %v218_v46 = vpop.f32.mrb[2].mxu1 }
 0x1de   :  { %v219_v47 = vadd.f32 %v218_v46, %v132_v42  ;;  %v940_v48 = vpop.f32.mrb[3].mxu1  ;;  %v222_v49 = vmax.f32 %v216_v44, 0.0 }
 0x1e0   :  { %v223_v50 = vmax.f32 %v219_v47, 0.0 }
 0x1e2   :  { %v224_v51 = vpack.c.bf16 %v223_v50, %v222_v49 }
 0x1e4   :  { %958 = vmatmul.mubr.bf16.vlgmr.msra.gmra.mrb[4].mxu0 %v224_v51  ;;  %v1098_v51 = vld [vmem:[#allocation5 + $0x180] sm:$0xff]  }
 0x1e5   :  { %997 = vmatprep.mubr.msk.bf16.mxu0 %vm1177_vm0, %v1176_v0  ;;  %982 = vmatpush3.bf16.msra.mxu0 %v1076_v54  ;;  %v584_v54 = vrot.slane %v468_v39, %v583_v53 }
 0x1e6   :  { %983 = vmatprep.subr.bf16.mxu0 %v1176_v0 }
 0x1e9   :  { %984 = vmatpush3.bf16.msra.mxu0 %v1077_v55 }
 0x1ea   :  { %985 = vmatprep.subr.bf16.mxu0 %v1176_v0 }
 0x1ed   :  { %986 = vmatpush3.bf16.msra.mxu0 %v1078_v56 }
 0x1ee   :  { %987 = vmatprep.subr.bf16.mxu0 %v1176_v0 }
 0x1f1   :  { %988 = vmatpush3.bf16.msra.mxu0 %v1079_v57 }
 0x1f2   :  { %989 = vmatprep.subr.bf16.mxu0 %v1176_v0 }
 0x1f5   :  { %990 = vmatpush3.bf16.msra.mxu0 %v1080_v58 }
 0x1f6   :  { %991 = vmatprep.subr.bf16.mxu0 %v1176_v0 }
 0x1f9   :  { %992 = vmatpush3.bf16.msra.mxu0 %v1081_v59 }
 0x1fa   :  { %993 = vmatprep.subr.bf16.mxu0 %v1176_v0 }
 0x1fd   :  { %994 = vmatpush3.bf16.msra.mxu0 %v1082_v10 }
 0x1fe   :  { %995 = vmatprep.subr.bf16.mxu0 %v1176_v0 }
 0x201   :  { %996 = vmatpush3.bf16.msra.mxu0 %v1083_v11 }
 0x202   :  { %1021 = vmatprep.subr.bf16.mxu0 %v1176_v0 }
 0x2b7   :  { %v329_v1 = vpop.f32.mrb[4].mxu0 }
 0x2b8   :  { %v330_v2 = vadd.f32 %v329_v1, %v246_v63  ;;  %v959_v3 = vpop.f32.mrb[5].mxu0  ;;  %v693_v1 = vld [vmem:[#allocation5] sm:$0x8] }
 0x2b9   :  { %v332_v4 = vpop.f32.mrb[6].mxu0  ;;  %v697_v3 = vsub.s32 6, %v1243_v19 }
 0x2ba   :  { %v333_v5 = vadd.f32 %v332_v4, %v246_v63  ;;  %v960_v6 = vpop.f32.mrb[7].mxu0  ;;  %v336_v7 = vmax.f32 %v330_v2, 0.0  ;;  %v694_v2 = vunpack.c.l.bf16 %v693_v1 }
 0x2bc   :  { %v337_v8 = vmax.f32 %v333_v5, 0.0 }
 0x2be   :  { %v338_v9 = vpack.c.bf16 %v337_v8, %v336_v7 }
 0x2c0   :  { %978 = vmatmul.mubr.bf16.vlgmr.msra.gmra.mrb[4].mxu1 %v338_v9 }
 0x2c1   :  { %1017 = vmatprep.mubr.msk.bf16.mxu1 %vm1177_vm0, %v1176_v0  ;;  %1002 = vmatpush3.bf16.msra.mxu1 %v1084_v12 }
 0x2c2   :  { %1003 = vmatprep.subr.bf16.mxu1 %v1176_v0 }
 0x2c5   :  { %1004 = vmatpush3.bf16.msra.mxu1 %v1085_v13 }
 0x2c6   :  { %1005 = vmatprep.subr.bf16.mxu1 %v1176_v0 }
 0x2c9   :  { %1006 = vmatpush3.bf16.msra.mxu1 %v1086_v14 }
 0x2ca   :  { %1007 = vmatprep.subr.bf16.mxu1 %v1176_v0 }
 0x2cd   :  { %1008 = vmatpush3.bf16.msra.mxu1 %v1087_v15 }
 0x2ce   :  { %1009 = vmatprep.subr.bf16.mxu1 %v1176_v0 }
 0x2d1   :  { %1010 = vmatpush3.bf16.msra.mxu1 %v1088_v16 }
 0x2d2   :  { %1011 = vmatprep.subr.bf16.mxu1 %v1176_v0 }
 0x2d5   :  { %1012 = vmatpush3.bf16.msra.mxu1 %v1089_v17 }
 0x2d6   :  { %1013 = vmatprep.subr.bf16.mxu1 %v1176_v0 }
 0x2d9   :  { %1014 = vmatpush3.bf16.msra.mxu1 %v1090_v30 }
 0x2da   :  { %1015 = vmatprep.subr.bf16.mxu1 %v1176_v0 }
 0x2dd   :  { %1016 = vmatpush3.bf16.msra.mxu1 %v1091_v31 }
 0x393   :  { %v441_v21 = vpop.f32.mrb[4].mxu1 }
 0x394   :  { %v442_v22 = vadd.f32 %v441_v21, %v358_v20  ;;  %v979_v23 = vpop.f32.mrb[5].mxu1 }
 0x395   :  { %v444_v24 = vpop.f32.mrb[6].mxu1 }
 0x396   :  { %v445_v25 = vadd.f32 %v444_v24, %v358_v20  ;;  %v980_v26 = vpop.f32.mrb[7].mxu1  ;;  %v448_v27 = vmax.f32 %v442_v22, 0.0 }
 0x398   :  { %v449_v28 = vmax.f32 %v445_v25, 0.0 }
 0x39a   :  { %v450_v29 = vpack.c.bf16 %v449_v28, %v448_v27 }
 0x39c   :  { %998 = vmatmul.mubr.bf16.vlgmr.msra.gmra.mrb[8].mxu0 %v450_v29 }
 0x39d   :  { %1037 = vmatprep.mubr.msk.bf16.mxu0 %vm1177_vm0, %v1176_v0  ;;  %1022 = vmatpush3.bf16.msra.mxu0 %v1092_v32 }
 0x39e   :  { %1023 = vmatprep.subr.bf16.mxu0 %v1176_v0 }
 0x3a1   :  { %1024 = vmatpush3.bf16.msra.mxu0 %v1093_v33 }
 0x3a2   :  { %1025 = vmatprep.subr.bf16.mxu0 %v1176_v0 }
 0x3a5   :  { %1026 = vmatpush3.bf16.msra.mxu0 %v1094_v34 }
 0x3a6   :  { %1027 = vmatprep.subr.bf16.mxu0 %v1176_v0 }
 0x3a9   :  { %1028 = vmatpush3.bf16.msra.mxu0 %v1095_v35 }
 0x3aa   :  { %1029 = vmatprep.subr.bf16.mxu0 %v1176_v0 }
 0x3ad   :  { %1030 = vmatpush3.bf16.msra.mxu0 %v1096_v36 }
 0x3ae   :  { %1031 = vmatprep.subr.bf16.mxu0 %v1176_v0 }
 0x3b1   :  { %1032 = vmatpush3.bf16.msra.mxu0 %v1097_v37 }
 0x3b2   :  { %1033 = vmatprep.subr.bf16.mxu0 %v1176_v0 }
 0x3b5   :  { %1034 = vmatpush3.bf16.msra.mxu0 %v1098_v51 }
 0x3b6   :  { %1035 = vmatprep.subr.bf16.mxu0 %v1176_v0  ;;  %v698_v0 = vrot.slane %v694_v2, %v697_v3 }
 0x3b9   :  { %1036 = vmatpush3.bf16.msra.mxu0 %v1099_v52 }
 0x46f   :  { %v555_v42 = vpop.f32.mrb[8].mxu0 }
 0x470   :  { %v556_v43 = vadd.f32 %v555_v42, %v472_v41  ;;  %v999_v44 = vpop.f32.mrb[9].mxu0 }
 0x471   :  { %v558_v45 = vpop.f32.mrb[10].mxu0 }
 0x472   :  { %v559_v46 = vadd.f32 %v558_v45, %v472_v41  ;;  %v1000_v47 = vpop.f32.mrb[11].mxu0  ;;  %v562_v48 = vmax.f32 %v556_v43, 0.0 }
 0x474   :  { %v563_v49 = vmax.f32 %v559_v46, 0.0 }
 0x476   :  { %v564_v50 = vpack.c.bf16 %v563_v49, %v562_v48 }
 0x478   :  { %1018 = vmatmul.mubr.bf16.vlgmr.msra.gmra.mrb[8].mxu1 %v564_v50 }
 0x54b   :  { %v667_v55 = vpop.f32.mrb[8].mxu1 }
 0x54c   :  { %v668_v56 = vadd.f32 %v667_v55, %v584_v54  ;;  %v1019_v57 = vpop.f32.mrb[9].mxu1 }
 0x54d   :  { %v670_v58 = vpop.f32.mrb[10].mxu1 }
 0x54e   :  { %v671_v59 = vadd.f32 %v670_v58, %v584_v54  ;;  %v1020_v60 = vpop.f32.mrb[11].mxu1  ;;  %v674_v61 = vmax.f32 %v668_v56, 0.0 }
 0x550   :  { %v675_v62 = vmax.f32 %v671_v59, 0.0 }
 0x552   :  { %v676_v63 = vpack.c.bf16 %v675_v62, %v674_v61 }
 0x554   :  { %1038 = vmatmul.mubr.bf16.vlgmr.msra.gmra.mrb[12].mxu0 %v676_v63 }
 0x627   :  { %v781_v4 = vpop.f32.mrb[12].mxu0 }
 0x628   :  { %v782_v5 = vadd.f32 %v781_v4, %v698_v0  ;;  %v1039_v6 = vpop.f32.mrb[13].mxu0 }
 0x629   :  { %v784_v7 = vpop.f32.mrb[14].mxu0 }
 0x62a   :  { %788 = vst [vmem:[#allocation7] sm:$0xff] %v782_v5  ;;  %v785_v8 = vadd.f32 %v784_v7, %v698_v0  ;;  %v1040_v9 = vpop.f32.mrb[15].mxu0 }
 0x62c   :  { %789 = vst [vmem:[#allocation7 + $0x8] sm:$0xff] %v785_v8 }
 0x62d   :  { %1155 = shalt.err (!%p1152_p6)
}
 0x62e   :  { %s1156_s10 = scalar_lea.hbm %s1306_s2, 256 }
 0x62f   :  { %p1157_p7 = scmp.ne.s32.totalorder %s1306_s2, %s1156_s10  ;;  %p1160_p8 = scmp.lt.u32.totalorder %s1156_s10, %s1306_s2 }
 0x631   :  { %p1162_p9 = pnand %p1160_p8, %p1157_p7 }
 0x633   :  { %1165 = shalt.err (!%p1162_p9)
}
 0x634   :  { %s1179_s15 = smov 128   ;;  %s1180_s16 = smov 8  }
 0x635   :  { %801 = dma.vmem_to_hbm [thread:$0]  %s796_s6, 256, %s1306_s2, [#allocation4], %s1179_s15, %s1179_s15, %s1180_s16  }
 0x636   :  { %1170 = dma.done.wait [#allocation4], 256  }
 0x637   :  { %1171 = vsyncadd [#allocation4], 4294967040 }
 0x638   :  { %805 = vsyncpa [#allocation3], 1 }
 0x639   :  { %806 = vsyncpa [#allocation6], 1 }
 0x63a   :  { %807 = vsyncpa [#allocation4], 1 }

</bundles_post_ra>
